<compile_context>
chip_gen: v5e
topology: v5e:2x2
jax: 0.10.0
libtpu: 0.0.40
codegen_flags: <defaults>
</compile_context>

<pallas_src>
import functools

import jax
import jax.numpy as jnp
from jax.experimental import pallas as pl
from jax.experimental.pallas import tpu as pltpu


def _round_up(a, m):
    return (a + m - 1) // m * m


def mlp_kernel(x_ref, w1_ref, b1_ref, w2_ref, b2_ref, w3_ref, b3_ref, o_ref):
    # All refs are f32.  x block: (TB, IN); weights/biases are whole-array,
    # VMEM-resident blocks.
    x = x_ref[...]
    h1 = jnp.dot(x, w1_ref[...], preferred_element_type=jnp.float32) + b1_ref[...]
    h1 = jnp.maximum(h1, 0.0)
    h2 = jnp.dot(h1, w2_ref[...], preferred_element_type=jnp.float32) + b2_ref[...]
    h2 = jnp.maximum(h2, 0.0)
    o_ref[...] = (jnp.dot(h2, w3_ref[...], preferred_element_type=jnp.float32)
                  + b3_ref[...])


@functools.partial(jax.jit, static_argnames=("tb_max",))
def network_model_forward(x, params, tb_max=4096):
    """x: (B, input_features) float32. params: dict of f32 weights/biases."""
    B, IN = x.shape
    H1 = params["w1"].shape[1]
    H2 = params["w2"].shape[1]
    OUT = params["w3"].shape[1]

    # Batch tile: multiple of 8 (f32 sublane), capped at tb_max.  Ragged last
    # block is handled by Pallas (grid = cdiv) -- no wrapper-side padding.
    TB = min(tb_max, _round_up(B, 8))
    grid = (pl.cdiv(B, TB),)

    # Constant-index specs: these arrays are DMA'd once and stay VMEM-resident.
    const = lambda a: pl.BlockSpec(a.shape, lambda i: (0,) * a.ndim)

    flops = 2 * B * (IN * H1 + H1 * H2 + H2 * OUT)
    bytes_accessed = 4 * (B * IN + B * OUT
                          + IN * H1 + H1 * H2 + H2 * OUT
                          + H1 + H2 + OUT)

    return pl.pallas_call(
        mlp_kernel,
        out_shape=jax.ShapeDtypeStruct((B, OUT), jnp.float32),
        grid=grid,
        in_specs=[
            pl.BlockSpec((TB, IN), lambda i: (i, 0)),
            const(params["w1"]), const(params["b1"]),
            const(params["w2"]), const(params["b2"]),
            const(params["w3"]), const(params["b3"]),
        ],
        out_specs=pl.BlockSpec((TB, OUT), lambda i: (i, 0)),
        compiler_params=pltpu.CompilerParams(
            dimension_semantics=("parallel",)),
        cost_estimate=pl.CostEstimate(flops=flops, transcendentals=0,
                                      bytes_accessed=bytes_accessed),
    )(x, params["w1"], params["b1"], params["w2"], params["b2"],
      params["w3"], params["b3"])


def init_params(key, input_features=130, hidden_1=25, hidden_2=25,
                output_features=2):
    """Deterministic init mimicking torch.nn.Linear (U[-1/sqrt(fan_in), +])."""
    ks = jax.random.split(key, 6)

    def linear(kw, kb, fan_in, fan_out):
        bound = 1.0 / jnp.sqrt(fan_in)
        w = jax.random.uniform(kw, (fan_in, fan_out), jnp.float32, -bound, bound)
        b = jax.random.uniform(kb, (1, fan_out), jnp.float32, -bound, bound)
        return w, b

    w1, b1 = linear(ks[0], ks[1], input_features, hidden_1)
    w2, b2 = linear(ks[2], ks[3], hidden_1, hidden_2)
    w3, b3 = linear(ks[4], ks[5], hidden_2, output_features)
    return {"w1": w1, "b1": b1, "w2": w2, "b2": b2, "w3": w3, "b3": b3}


def reference_forward(x, p):
    h1 = jnp.maximum(x @ p["w1"] + p["b1"], 0.0)
    h2 = jnp.maximum(h1 @ p["w2"] + p["b2"], 0.0)
    return h2 @ p["w3"] + p["b3"]


if __name__ == "__main__":
    key = jax.random.PRNGKey(0)
    k_params, k_x, k_x2 = jax.random.split(key, 3)

    IN = 130
    params = init_params(k_params, input_features=IN)

    # Small primary test (single grid step).
    B = 8
    x = jax.random.normal(k_x, (B, IN), jnp.float32)
    out = jax.block_until_ready(network_model_forward(x, params))
    assert out.shape == (B, 2), out.shape
    ref = reference_forward(x, params)
    assert jnp.allclose(out, ref, atol=2e-2, rtol=2e-2), "mismatch (B=8)"

    # Multi-step grid + ragged last block test: TB=128, grid=3, last block
    # covers rows 256..383 of which only 256..299 are valid (Pallas clips).
    B2 = 300
    x2 = jax.random.normal(k_x2, (B2, IN), jnp.float32)
    out2 = jax.block_until_ready(network_model_forward(x2, params, tb_max=128))
    assert out2.shape == (B2, 2), out2.shape
    ref2 = reference_forward(x2, params)
    assert jnp.allclose(out2, ref2, atol=2e-2, rtol=2e-2), "mismatch (B=300)"

    print("KERNEL_OK")
</pallas_src>

<mosaic_0001>
module attributes {stable_mosaic.version = 11 : i64} {
  func.func @mlp_kernel(%arg0: i32, %arg1: memref<8x130xf32, #tpu.memory_space<vmem>>, %arg2: memref<130x25xf32, #tpu.memory_space<vmem>>, %arg3: memref<1x25xf32, #tpu.memory_space<vmem>>, %arg4: memref<25x25xf32, #tpu.memory_space<vmem>>, %arg5: memref<1x25xf32, #tpu.memory_space<vmem>>, %arg6: memref<25x2xf32, #tpu.memory_space<vmem>>, %arg7: memref<1x2xf32, #tpu.memory_space<vmem>>, %arg8: memref<8x2xf32, #tpu.memory_space<vmem>>) attributes {dimension_semantics = [#tpu.dimension_semantics<parallel>], iteration_bounds = array<i64: 1>, scalar_prefetch = 0 : i64, scratch_operands = 0 : i64, tpu.core_type = #tpu.core_type<tc>, window_params = [{transform_indices = @transform_0, window_bounds = array<i64: 8, 130>}, {pipeline_mode = #tpu.pipeline_mode<synchronous>, transform_indices = @transform_1, window_bounds = array<i64: 130, 25>}, {pipeline_mode = #tpu.pipeline_mode<synchronous>, transform_indices = @transform_2, window_bounds = array<i64: 1, 25>}, {pipeline_mode = #tpu.pipeline_mode<synchronous>, transform_indices = @transform_3, window_bounds = array<i64: 25, 25>}, {pipeline_mode = #tpu.pipeline_mode<synchronous>, transform_indices = @transform_4, window_bounds = array<i64: 1, 25>}, {pipeline_mode = #tpu.pipeline_mode<synchronous>, transform_indices = @transform_5, window_bounds = array<i64: 25, 2>}, {pipeline_mode = #tpu.pipeline_mode<synchronous>, transform_indices = @transform_6, window_bounds = array<i64: 1, 2>}, {transform_indices = @transform_7, window_bounds = array<i64: 8, 2>}]} {
    %c0 = arith.constant 0 : index
    %c0_0 = arith.constant 0 : index
    %0 = vector.load %arg1[%c0, %c0_0] : memref<8x130xf32, #tpu.memory_space<vmem>>, vector<8x130xf32>
    %c0_1 = arith.constant 0 : index
    %c0_2 = arith.constant 0 : index
    %1 = vector.load %arg2[%c0_1, %c0_2] : memref<130x25xf32, #tpu.memory_space<vmem>>, vector<130x25xf32>
    %cst = arith.constant dense<0.000000e+00> : vector<8x25xf32>
    %2 = tpu.matmul %0, %1, %cst {dimension_numbers = #tpu.dot_dimension_numbers<[1], [0], [0], [1], [0, 0, 1, 1], [], []>} : vector<8x130xf32>, vector<130x25xf32>, vector<8x25xf32> -> vector<8x25xf32>
    %c0_3 = arith.constant 0 : index
    %c0_4 = arith.constant 0 : index
    %3 = vector.load %arg3[%c0_3, %c0_4] : memref<1x25xf32, #tpu.memory_space<vmem>>, vector<1x25xf32>
    %4 = vector.broadcast %3 : vector<1x25xf32> to vector<8x25xf32>
    %5 = arith.addf %2, %4 : vector<8x25xf32>
    %cst_5 = arith.constant 0.000000e+00 : f32
    %6 = vector.broadcast %cst_5 : f32 to vector<8x25xf32>
    %7 = arith.maximumf %5, %6 : vector<8x25xf32>
    %c0_6 = arith.constant 0 : index
    %c0_7 = arith.constant 0 : index
    %8 = vector.load %arg4[%c0_6, %c0_7] : memref<25x25xf32, #tpu.memory_space<vmem>>, vector<25x25xf32>
    %cst_8 = arith.constant dense<0.000000e+00> : vector<8x25xf32>
    %9 = tpu.matmul %7, %8, %cst_8 {dimension_numbers = #tpu.dot_dimension_numbers<[1], [0], [0], [1], [0, 0, 1, 1], [], []>} : vector<8x25xf32>, vector<25x25xf32>, vector<8x25xf32> -> vector<8x25xf32>
    %c0_9 = arith.constant 0 : index
    %c0_10 = arith.constant 0 : index
    %10 = vector.load %arg5[%c0_9, %c0_10] : memref<1x25xf32, #tpu.memory_space<vmem>>, vector<1x25xf32>
    %11 = vector.broadcast %10 : vector<1x25xf32> to vector<8x25xf32>
    %12 = arith.addf %9, %11 : vector<8x25xf32>
    %cst_11 = arith.constant 0.000000e+00 : f32
    %13 = vector.broadcast %cst_11 : f32 to vector<8x25xf32>
    %14 = arith.maximumf %12, %13 : vector<8x25xf32>
    %c0_12 = arith.constant 0 : index
    %c0_13 = arith.constant 0 : index
    %15 = vector.load %arg6[%c0_12, %c0_13] : memref<25x2xf32, #tpu.memory_space<vmem>>, vector<25x2xf32>
    %cst_14 = arith.constant dense<0.000000e+00> : vector<8x2xf32>
    %16 = tpu.matmul %14, %15, %cst_14 {dimension_numbers = #tpu.dot_dimension_numbers<[1], [0], [0], [1], [0, 0, 1, 1], [], []>} : vector<8x25xf32>, vector<25x2xf32>, vector<8x2xf32> -> vector<8x2xf32>
    %c0_15 = arith.constant 0 : index
    %c0_16 = arith.constant 0 : index
    %17 = vector.load %arg7[%c0_15, %c0_16] : memref<1x2xf32, #tpu.memory_space<vmem>>, vector<1x2xf32>
    %18 = vector.broadcast %17 : vector<1x2xf32> to vector<8x2xf32>
    %19 = arith.addf %16, %18 : vector<8x2xf32>
    %c0_17 = arith.constant 0 : index
    %c0_18 = arith.constant 0 : index
    %20 = vector.load %arg8[%c0_17, %c0_18] : memref<8x2xf32, #tpu.memory_space<vmem>>, vector<8x2xf32>
    tpu.vector_store %arg8[%c0_17, %c0_18], %19 {strides = array<i32>} : memref<8x2xf32, #tpu.memory_space<vmem>>, vector<8x2xf32>,
    return
  }
  func.func @transform_0(%arg0: i32) -> (i32, i32) {
    %c0_i32 = arith.constant 0 : i32
    %c0_i32_0 = arith.constant 0 : i32
    return %arg0, %c0_i32 : i32, i32
  }
  func.func @transform_1(%arg0: i32) -> (i32, i32) {
    %c0_i32 = arith.constant 0 : i32
    %c0_i32_0 = arith.constant 0 : i32
    %c0_i32_1 = arith.constant 0 : i32
    return %c0_i32, %c0_i32_0 : i32, i32
  }
  func.func @transform_2(%arg0: i32) -> (i32, i32) {
    %c0_i32 = arith.constant 0 : i32
    %c0_i32_0 = arith.constant 0 : i32
    %c0_i32_1 = arith.constant 0 : i32
    return %c0_i32, %c0_i32_0 : i32, i32
  }
  func.func @transform_3(%arg0: i32) -> (i32, i32) {
    %c0_i32 = arith.constant 0 : i32
    %c0_i32_0 = arith.constant 0 : i32
    %c0_i32_1 = arith.constant 0 : i32
    return %c0_i32, %c0_i32_0 : i32, i32
  }
  func.func @transform_4(%arg0: i32) -> (i32, i32) {
    %c0_i32 = arith.constant 0 : i32
    %c0_i32_0 = arith.constant 0 : i32
    %c0_i32_1 = arith.constant 0 : i32
    return %c0_i32, %c0_i32_0 : i32, i32
  }
  func.func @transform_5(%arg0: i32) -> (i32, i32) {
    %c0_i32 = arith.constant 0 : i32
    %c0_i32_0 = arith.constant 0 : i32
    %c0_i32_1 = arith.constant 0 : i32
    return %c0_i32, %c0_i32_0 : i32, i32
  }
  func.func @transform_6(%arg0: i32) -> (i32, i32) {
    %c0_i32 = arith.constant 0 : i32
    %c0_i32_0 = arith.constant 0 : i32
    %c0_i32_1 = arith.constant 0 : i32
    return %c0_i32, %c0_i32_0 : i32, i32
  }
  func.func @transform_7(%arg0: i32) -> (i32, i32) {
    %c0_i32 = arith.constant 0 : i32
    %c0_i32_0 = arith.constant 0 : i32
    return %arg0, %c0_i32 : i32, i32
  }
}

</mosaic_0001>

<bundles_post_ra>
// kernel: network_model_forward.1
= control target key start
LH: loop header
LB: loop body
LE: loop exit
PB: predicated region body
PF: predicated region fallthrough
CT: control target
= control target key end

     0   :  { %vm53_vm0 = vcmask 1041408   ;;  %vm49_vm1 = vcmask 15360   ;;  %vm110_vm2 = vcmask 1040384   ;;  %vm106_vm3 = vcmask 203776   ;;  %s318_s1 = inlined_call_operand.vmem [shape: f32[130,25], index: 1, kind: input, shape index: {}]   ;;  %s319_s0 = inlined_call_operand.vmem [shape: f32[8,130], index: 0, kind: input, shape index: {}]   ;;  %s320_s2 = inlined_call_operand.vmem [shape: f32[1,25], index: 2, kind: input, shape index: {}]   ;;  %s321_s4 = inlined_call_operand.vmem [shape: f32[1,25], index: 4, kind: input, shape index: {}]   ;;  %s322_s3 = inlined_call_operand.vmem [shape: f32[25,25], index: 3, kind: input, shape index: {}]   ;;  %s323_s5 = inlined_call_operand.vmem [shape: f32[25,2], index: 5, kind: input, shape index: {}]   ;;  %s324_s6 = inlined_call_operand.vmem [shape: f32[1,2], index: 6, kind: input, shape index: {}]   ;;  %s325_s7 = inlined_call_operand.vmem [shape: f32[8,2], index: 7, kind: output, shape index: {}]  }
   0x1   :  { %v43_v0 = vld [vmem:[%s318_s1 + $0x78] sm:$0xff]  ;;  %v42_v1 = vld [vmem:[%s318_s1 + $0x70] sm:$0xff]  ;;  %v41_v2 = vld [vmem:[%s318_s1 + $0x68] sm:$0xff] }
   0x2   :  { %57 = vmatpush.msra.mxu0 %v43_v0  ;;  %v40_v3 = vld [vmem:[%s318_s1 + $0x60] sm:$0xff]  ;;  %v39_v5 = vld [vmem:[%s318_s1 + $0x58] sm:$0xff]  ;;  %v27_v6 = vld [vmem:[%s319_s0 + $0x8] sm:$0xff] }
   0x3   :  { %v44_v4 = vld [vmem:[%s318_s1 + $0x80] sm:$0x3]  ;;  %v38_v7 = vld [vmem:[%s318_s1 + $0x50] sm:$0xff]  ;;  %v37_v8 = vld [vmem:[%s318_s1 + $0x48] sm:$0xff] }
   0x4   :  { %58 = vmatpush.msra.mxu0 %v42_v1  ;;  %174 = vmatpush.msk.msra.mxu1 %vm53_vm0, %v44_v4  ;;  %v36_v9 = vld [vmem:[%s318_s1 + $0x40] sm:$0xff]  ;;  %v35_v10 = vld [vmem:[%s318_s1 + $0x38] sm:$0xff]  ;;  %v34_v11 = vld [vmem:[%s318_s1 + $0x30] sm:$0xff] }
   0x5   :  { %175 = vmatmul.msk.f32.vlgmr.msra.gmra.mxu1 %vm49_vm1, %v27_v6  ;;  %v33_v12 = vld [vmem:[%s318_s1 + $0x28] sm:$0xff]  ;;  %v32_v13 = vld [vmem:[%s318_s1 + $0x20] sm:$0xff]  ;;  %v31_v14 = vld [vmem:[%s318_s1 + $0x18] sm:$0xff] }
   0x6   :  { %59 = vmatpush.msra.mxu0 %v41_v2  ;;  %v30_v15 = vld [vmem:[%s318_s1 + $0x10] sm:$0xff]  ;;  %v29_v16 = vld [vmem:[%s318_s1 + $0x8] sm:$0xff]  ;;  %v28_v17 = vld [vmem:[%s318_s1] sm:$0xff] }
   0x7   :  { %v26_v18 = vld [vmem:[%s319_s0] sm:$0xff]  ;;  %v101_v19 = vld [vmem:[%s322_s3 + $0x18] sm:$0x1]  ;;  %v100_v20 = vld [vmem:[%s322_s3 + $0x10] sm:$0xff] }
   0x8   :  { %60 = vmatpush.msra.mxu0 %v40_v3  ;;  %176 = vmatpush.msk.msra.mxu2 %vm110_vm2, %v101_v19  ;;  %v99_v21 = vld [vmem:[%s322_s3 + $0x8] sm:$0xff]  ;;  %v98_v22 = vld [vmem:[%s322_s3] sm:$0xff]  ;;  %v138_v23 = vld [vmem:[%s323_s5 + $0x18] sm:$0x1] }
   0x9   :  { %178 = vmatpush.msk.msra.mxu3 %vm110_vm2, %v138_v23  ;;  %v180_v24 = vld [vmem:[%s320_s2] ss:$0 sm:$0xff]  ;;  %v137_v30 = vld [vmem:[%s323_s5 + $0x10] sm:$0xff]  ;;  %v136_v31 = vld [vmem:[%s323_s5 + $0x8] sm:$0xff] }
   0xa   :  { %61 = vmatpush.msra.mxu0 %v39_v5  ;;  %127 = vmatpush.msra.mxu2 %v100_v20  ;;  %v135_v32 = vld [vmem:[%s323_s5] sm:$0xff] }
   0xb   :  { %162 = vmatpush.msra.mxu3 %v137_v30  ;;  %v181_v33 = vld [vmem:[%s321_s4] ss:$0 sm:$0xff] }
   0xc   :  { %62 = vmatpush.msra.mxu0 %v38_v7  ;;  %128 = vmatpush.msra.mxu2 %v99_v21  ;;  %v182_v37 = vld [vmem:[%s324_s6] ss:$0 sm:$0xff] }
   0xd   :  { %163 = vmatpush.msra.mxu3 %v136_v31 }
   0xe   :  { %63 = vmatpush.msra.mxu0 %v37_v8  ;;  %129 = vmatpush.msra.mxu2 %v98_v22 }
   0xf   :  { %164 = vmatpush.msra.mxu3 %v135_v32 }
  0x10   :  { %64 = vmatpush.msra.mxu0 %v36_v9 }
  0x12   :  { %65 = vmatpush.msra.mxu0 %v35_v10 }
  0x14   :  { %66 = vmatpush.msra.mxu0 %v34_v11 }
  0x16   :  { %67 = vmatpush.msra.mxu0 %v33_v12 }
  0x18   :  { %68 = vmatpush.msra.mxu0 %v32_v13 }
  0x1a   :  { %69 = vmatpush.msra.mxu0 %v31_v14 }
  0x1c   :  { %70 = vmatpush.msra.mxu0 %v30_v15 }
  0x1e   :  { %71 = vmatpush.msra.mxu0 %v29_v16 }
  0x20   :  { %72 = vmatpush.msra.mxu0 %v28_v17 }
  0x21   :  { %73 = vmatmul.f32.vlgmr.msra.gmra.mxu0 %v26_v18 }
  0x82   :  { %v94_v26 = vpop.f32.mrf.mxu1 }
  0x9e   :  { %v74_v25 = vpop.f32.mrf.mxu0 }
  0x9f   :  { %v75_v27 = vadd.f32 %v180_v24, %v74_v25 }
  0xa1   :  { %v95_v28 = vadd.f32 %v94_v26, %v75_v27 }
  0xa3   :  { %v97_v29 = vmax.f32 %v95_v28, 0.0 }
  0xa5   :  { %177 = vmatmul.msk.f32.vlgmr.msra.gmra.mxu2 %vm106_vm3, %v97_v29 }
 0x128   :  { %v131_v34 = vpop.f32.mrf.mxu2 }
 0x129   :  { %v132_v35 = vadd.f32 %v181_v33, %v131_v34 }
 0x12b   :  { %v134_v36 = vmax.f32 %v132_v35, 0.0 }
 0x12d   :  { %179 = vmatmul.msk.f32.vlgmr.msra.gmra.mxu3 %vm106_vm3, %v134_v36 }
 0x1b0   :  { %v166_v38 = vpop.f32.mrf.mxu3 }
 0x1b1   :  { %v167_v39 = vadd.f32 %v182_v37, %v166_v38 }
 0x1b3   :  { %169 = vst.msk [vmem:[%s325_s7] sm:$0xff] %vm49_vm1, %v167_v39 }

</bundles_post_ra>
